<compile_context>
chip_gen: v6e
topology: v6e:2x2x1
jax: 0.10.0
libtpu: 0.0.40
codegen_flags: <defaults>
</compile_context>

<pallas_src>
import functools
import math

import jax
import jax.numpy as jnp
from jax.experimental import pallas as pl
from jax.experimental.pallas import tpu as pltpu


# ----------------------------------------------------------------------------
# Pallas kernel: embedding (at l==0) + all residual attention blocks
# ----------------------------------------------------------------------------
def _transformer_kernel(ids_ref, tok_ref, pos_ref,
                        ln1w_ref, ln1b_ref,
                        wqkv_ref, bqkv_ref,
                        wo_ref, bo_ref,
                        ln2w_ref, ln2b_ref,
                        wfc_ref, bfc_ref, wproj_ref, bproj_ref,
                        o_ref):
    S, D = o_ref.shape
    V = tok_ref.shape[0]
    G, _, Dh = wqkv_ref.shape        # G = 3 * n_heads
    H = G // 3

    # ---- layer-0 prologue: token embedding (exact one-hot matmul) + pos ----
    @pl.when(pl.program_id(0) == 0)
    def _():
        ids = ids_ref[...]                                            # (S, 1) int32
        onehot = (jax.lax.broadcasted_iota(jnp.int32, (S, V), 1) == ids)
        emb = jnp.dot(onehot.astype(jnp.float32), tok_ref[...],
                      preferred_element_type=jnp.float32)             # exact gather
        o_ref[...] = emb + pos_ref[...]

    x = o_ref[...]                           # (S, D) f32 running activation

    def layer_norm(v, w, b):                 # eps matches torch.nn.LayerNorm
        mu = jnp.mean(v, axis=-1, keepdims=True)
        c = v - mu
        var = jnp.mean(c * c, axis=-1, keepdims=True)
        return c * jax.lax.rsqrt(var + 1e-5) * w + b

    # --- attention branch: x + out_proj(softmax(qk^T) v) --------------------
    # 1/sqrt(Dh) scale is pre-folded into wq / bq (wrapper-side, one-time).
    # TODO(synk): attn_mask path (torch module supports it) not implemented;
    #             this config uses attn_mask=None.
    x1 = layer_norm(x, ln1w_ref[...], ln1b_ref[...])
    x1g = jnp.broadcast_to(x1.astype(jnp.bfloat16), (G, S, D))
    qkv = jnp.einsum('gsd,gde->gse', x1g, wqkv_ref[...],
                     preferred_element_type=jnp.float32) + bqkv_ref[...]  # (3H,S,Dh)
    q = qkv[:H]                              # already scaled
    k = qkv[H:2 * H]
    v = qkv[2 * H:]

    scores = jnp.einsum('hqd,hkd->hqk',
                        q.astype(jnp.bfloat16), k.astype(jnp.bfloat16),
                        preferred_element_type=jnp.float32)           # (H, S, S)
    scores = scores - jnp.max(scores, axis=-1, keepdims=True)
    p = jnp.exp(scores)
    p = p * pl.reciprocal(jnp.sum(p, axis=-1, keepdims=True), approx=True)

    ctx = jnp.einsum('hqk,hkd->hqd',
                     p.astype(jnp.bfloat16), v.astype(jnp.bfloat16),
                     preferred_element_type=jnp.float32)              # (H, S, Dh)
    attn = jnp.einsum('hsd,hde->hse',
                      ctx.astype(jnp.bfloat16), wo_ref[...],
                      preferred_element_type=jnp.float32)             # (H, S, D)
    x = x + jnp.sum(attn, axis=0) + bo_ref[...]

    # --- MLP branch: x + c_proj(GELU(c_fc(LN2(x)))) --------------------------
    x2 = layer_norm(x, ln2w_ref[...], ln2b_ref[...])
    hid = jnp.dot(x2.astype(jnp.bfloat16), wfc_ref[...],
                  preferred_element_type=jnp.float32) + bfc_ref[...]
    # exact (erf) GELU, matching torch.nn.GELU() default
    hid = 0.5 * hid * (1.0 + jax.lax.erf(hid * (1.0 / math.sqrt(2.0))))
    mlp = jnp.dot(hid.astype(jnp.bfloat16), wproj_ref[...],
                  preferred_element_type=jnp.float32) + bproj_ref[...]

    o_ref[...] = x + mlp                     # stays resident for next layer


_PARAM_ORDER = ("ln1_w", "ln1_b",
                "wqkv", "bqkv",
                "wo", "bo",
                "ln2_w", "ln2_b",
                "wfc", "bfc", "wproj", "bproj")


def transformer_forward_pallas(token_ids, tok_emb, pos_emb, stacked, n_layers):
    """token_ids: (1, S) int; tok_emb: (V, D) f32; pos_emb: (S, D) f32;
    stacked: dict of per-layer-stacked params (leading L axis)."""
    S, D = pos_emb.shape
    ids = token_ids.reshape(S, 1).astype(jnp.int32)

    def const_spec(arr):                      # fetched once, stays resident
        nd = arr.ndim
        return pl.BlockSpec(tuple(arr.shape), lambda l, n=nd: (0,) * n)

    def layer_spec(arr):                      # streamed per grid step (layer)
        n_rest = arr.ndim - 1
        return pl.BlockSpec((pl.Squeezed(),) + tuple(arr.shape[1:]),
                            lambda l, n=n_rest: (l,) + (0,) * n)

    w_args = [stacked[name] for name in _PARAM_ORDER]
    in_specs = ([const_spec(ids), const_spec(tok_emb), const_spec(pos_emb)]
                + [layer_spec(a) for a in w_args])

    return pl.pallas_call(
        _transformer_kernel,
        out_shape=jax.ShapeDtypeStruct((S, D), jnp.float32),
        grid_spec=pltpu.PrefetchScalarGridSpec(
            num_scalar_prefetch=0,
            grid=(n_layers,),
            in_specs=in_specs,
            out_specs=pl.BlockSpec((S, D), lambda l: (0, 0)),
        ),
        compiler_params=pltpu.CompilerParams(
            dimension_semantics=("arbitrary",)),
    )(ids, tok_emb, pos_emb, *w_args)


# ----------------------------------------------------------------------------
# Parameter construction (deterministic, mirrors the torch module's shapes)
# ----------------------------------------------------------------------------
def make_positional_encoding(n_seq, model_dim):
    assert model_dim % 2 == 0, "positional encoding assumes even model_dim"
    number = jnp.arange(0, n_seq, dtype=jnp.float32).reshape(-1, 1)
    division_term = jnp.exp(math.log(10000.0) *
                            (jnp.arange(0, model_dim, 2, dtype=jnp.float32) / model_dim))
    pos = jnp.zeros((n_seq, model_dim), dtype=jnp.float32)
    pos = pos.at[:, 0::2].set(jnp.sin(number / division_term))
    pos = pos.at[:, 1::2].set(jnp.cos(number / division_term))
    return pos  # (n_seq, model_dim)


def init_stacked_params(key, n_layers, model_dim, n_heads):
    """Per-layer params, pre-transposed / per-head stacked (1/sqrt(Dh) folded
    into Wq/bq), then stacked over a leading L axis. Matmul weights in bf16."""
    D, H = model_dim, n_heads
    Dh = D // H
    scale = 1.0 / math.sqrt(Dh)
    s = 0.02
    keys = jax.random.split(key, n_layers)

    def one(k):
        ks = jax.random.split(k, 8)
        # torch layouts: Linear weight is (out, in)
        in_proj_w = s * jax.random.normal(ks[0], (3 * D, D), jnp.float32)
        in_proj_b = s * jax.random.normal(ks[1], (3 * D,), jnp.float32)
        out_proj_w = s * jax.random.normal(ks[2], (D, D), jnp.float32)
        out_proj_b = s * jax.random.normal(ks[3], (D,), jnp.float32)
        fc_w = s * jax.random.normal(ks[4], (4 * D, D), jnp.float32)
        fc_b = s * jax.random.normal(ks[5], (4 * D,), jnp.float32)
        proj_w = s * jax.random.normal(ks[6], (D, 4 * D), jnp.float32)
        proj_b = s * jax.random.normal(ks[7], (D,), jnp.float32)

        def head_w(w):   # (D_out, D_in) -> (H, D, Dh) so that q_h = x @ W[h]
            return w.reshape(H, Dh, D).transpose(0, 2, 1)

        def head_b(b):   # (D,) -> (H, 1, Dh)
            return b.reshape(H, 1, Dh)

        wq = head_w(in_proj_w[:D]); wk = head_w(in_proj_w[D:2 * D]); wv = head_w(in_proj_w[2 * D:])
        bq = head_b(in_proj_b[:D]); bk = head_b(in_proj_b[D:2 * D]); bv = head_b(in_proj_b[2 * D:])

        return dict(
            ln1_w=jnp.ones((1, D), jnp.float32),
            ln1_b=jnp.zeros((1, D), jnp.float32),
            # softmax 1/sqrt(Dh) scale folded into the Q projection (one-time)
            wqkv=jnp.concatenate([wq * scale, wk, wv], axis=0),   # (3H, D, Dh)
            bqkv=jnp.concatenate([bq * scale, bk, bv], axis=0),   # (3H, 1, Dh)
            wo=out_proj_w.T.reshape(H, Dh, D),     # ctx_h @ wo[h], summed over h
            bo=out_proj_b.reshape(1, D),
            ln2_w=jnp.ones((1, D), jnp.float32),
            ln2_b=jnp.zeros((1, D), jnp.float32),
            wfc=fc_w.T,                            # (D, 4D)
            bfc=fc_b.reshape(1, 4 * D),
            wproj=proj_w.T,                        # (4D, D)
            bproj=proj_b.reshape(1, D),
        )

    per_layer = [one(k) for k in keys]
    stacked = {name: jnp.stack([p[name] for p in per_layer], axis=0)
               for name in per_layer[0]}
    for name in ("wqkv", "wo", "wfc", "wproj"):
        stacked[name] = stacked[name].astype(jnp.bfloat16)
    return stacked


# ----------------------------------------------------------------------------
# Full Transformer forward (whole thing is one pallas_call) + pure-JAX ref
# ----------------------------------------------------------------------------
@functools.partial(jax.jit, static_argnames=("n_layers",))
def transformer_forward(token_ids, tok_emb, pos_emb, stacked_params, n_layers):
    # == Transformer.forward(token_ids).  Output is already (S, D) == squeeze(0).
    return transformer_forward_pallas(token_ids, tok_emb, pos_emb,
                                      stacked_params, n_layers)


def reference_forward(token_ids, tok_emb, pos_emb, stacked, n_layers):
    """Plain-jnp mirror of the kernel math (same bf16 casts, exact reciprocal)."""
    x = jnp.take(tok_emb, token_ids.reshape(-1), axis=0) + pos_emb

    def ln(v, w, b):
        mu = jnp.mean(v, -1, keepdims=True)
        c = v - mu
        var = jnp.mean(c * c, -1, keepdims=True)
        return c * jax.lax.rsqrt(var + 1e-5) * w + b

    for l in range(n_layers):
        p = {k: stacked[k][l] for k in stacked}
        H = p["wo"].shape[0]
        x1 = ln(x, p["ln1_w"], p["ln1_b"]).astype(jnp.bfloat16)
        qkv = jnp.einsum('sd,gde->gse', x1, p["wqkv"],
                         preferred_element_type=jnp.float32) + p["bqkv"]
        q, k_, v = qkv[:H], qkv[H:2 * H], qkv[2 * H:]
        sc = jnp.einsum('hqd,hkd->hqk', q.astype(jnp.bfloat16), k_.astype(jnp.bfloat16),
                        preferred_element_type=jnp.float32)
        sc = sc - sc.max(-1, keepdims=True)
        pr = jnp.exp(sc)
        pr = pr / pr.sum(-1, keepdims=True)
        ctx = jnp.einsum('hqk,hkd->hqd', pr.astype(jnp.bfloat16), v.astype(jnp.bfloat16),
                         preferred_element_type=jnp.float32)
        attn = jnp.einsum('hsd,hde->se', ctx.astype(jnp.bfloat16), p["wo"],
                          preferred_element_type=jnp.float32) + p["bo"]
        x = x + attn
        x2 = ln(x, p["ln2_w"], p["ln2_b"]).astype(jnp.bfloat16)
        hid = jnp.dot(x2, p["wfc"], preferred_element_type=jnp.float32) + p["bfc"]
        hid = 0.5 * hid * (1.0 + jax.lax.erf(hid * (1.0 / math.sqrt(2.0))))
        mlp = jnp.dot(hid.astype(jnp.bfloat16), p["wproj"],
                      preferred_element_type=jnp.float32) + p["bproj"]
        x = x + mlp
    return x


if __name__ == "__main__":
    # Small config consistent with the module
    max_length = 8      # S
    vocab_size = 100
    n_layers = 2
    model_dim = 32      # D
    attn_heads = 4
    # attn_mask = None  (module supports it; not exercised here)

    key = jax.random.PRNGKey(0)
    k_tok, k_ids, k_blocks = jax.random.split(key, 3)

    tok_emb = 0.02 * jax.random.normal(k_tok, (vocab_size, model_dim), jnp.float32)
    pos_emb = make_positional_encoding(max_length, model_dim)
    stacked = init_stacked_params(k_blocks, n_layers, model_dim, attn_heads)

    token_ids = jax.random.randint(k_ids, (1, max_length), 0, vocab_size, jnp.int32)

    out = transformer_forward(token_ids, tok_emb, pos_emb, stacked, n_layers)
    out = jax.block_until_ready(out)

    ref = reference_forward(token_ids, tok_emb, pos_emb, stacked, n_layers)

    assert out.shape == (max_length, model_dim)
    assert jnp.all(jnp.isfinite(out))
    assert jnp.allclose(out, ref, atol=2e-2, rtol=2e-2), \
        float(jnp.max(jnp.abs(out - ref)))
    print("KERNEL_OK")
</pallas_src>

<mosaic_0001>
module attributes {stable_mosaic.version = 11 : i64} {
  func.func @_transformer_kernel(%arg0: i32, %arg1: memref<8x1xi32, #tpu.memory_space<vmem>>, %arg2: memref<100x32xf32, #tpu.memory_space<vmem>>, %arg3: memref<8x32xf32, #tpu.memory_space<vmem>>, %arg4: memref<1x1x32xf32, #tpu.memory_space<vmem>>, %arg5: memref<1x1x32xf32, #tpu.memory_space<vmem>>, %arg6: memref<1x12x32x8xbf16, #tpu.memory_space<vmem>>, %arg7: memref<1x12x1x8xf32, #tpu.memory_space<vmem>>, %arg8: memref<1x4x8x32xbf16, #tpu.memory_space<vmem>>, %arg9: memref<1x1x32xf32, #tpu.memory_space<vmem>>, %arg10: memref<1x1x32xf32, #tpu.memory_space<vmem>>, %arg11: memref<1x1x32xf32, #tpu.memory_space<vmem>>, %arg12: memref<1x32x128xbf16, #tpu.memory_space<vmem>>, %arg13: memref<1x1x128xf32, #tpu.memory_space<vmem>>, %arg14: memref<1x128x32xbf16, #tpu.memory_space<vmem>>, %arg15: memref<1x1x32xf32, #tpu.memory_space<vmem>>, %arg16: memref<8x32xf32, #tpu.memory_space<vmem>>) attributes {dimension_semantics = [#tpu.dimension_semantics<arbitrary>], iteration_bounds = array<i64: 2>, scalar_prefetch = 0 : i64, scratch_operands = 0 : i64, tpu.core_type = #tpu.core_type<tc>, window_params = [{pipeline_mode = #tpu.pipeline_mode<synchronous>, transform_indices = @transform_0, window_bounds = array<i64: 8, 1>}, {pipeline_mode = #tpu.pipeline_mode<synchronous>, transform_indices = @transform_1, window_bounds = array<i64: 100, 32>}, {pipeline_mode = #tpu.pipeline_mode<synchronous>, transform_indices = @transform_2, window_bounds = array<i64: 8, 32>}, {transform_indices = @transform_3, window_bounds = array<i64: 1, 1, 32>}, {transform_indices = @transform_4, window_bounds = array<i64: 1, 1, 32>}, {transform_indices = @transform_5, window_bounds = array<i64: 1, 12, 32, 8>}, {transform_indices = @transform_6, window_bounds = array<i64: 1, 12, 1, 8>}, {transform_indices = @transform_7, window_bounds = array<i64: 1, 4, 8, 32>}, {transform_indices = @transform_8, window_bounds = array<i64: 1, 1, 32>}, {transform_indices = @transform_9, window_bounds = array<i64: 1, 1, 32>}, {transform_indices = @transform_10, window_bounds = array<i64: 1, 1, 32>}, {transform_indices = @transform_11, window_bounds = array<i64: 1, 32, 128>}, {transform_indices = @transform_12, window_bounds = array<i64: 1, 1, 128>}, {transform_indices = @transform_13, window_bounds = array<i64: 1, 128, 32>}, {transform_indices = @transform_14, window_bounds = array<i64: 1, 1, 32>}, {pipeline_mode = #tpu.pipeline_mode<synchronous>, transform_indices = @transform_15, window_bounds = array<i64: 8, 32>}]} {
    %c0_i32 = arith.constant 0 : i32
    %0 = arith.cmpi eq, %arg0, %c0_i32 : i32
    %1 = arith.extui %0 : i1 to i32
    %c0_i32_0 = arith.constant 0 : i32
    %2 = arith.cmpi ne, %1, %c0_i32_0 : i32
    scf.if %2 {
      %c0_64 = arith.constant 0 : index
      %c0_65 = arith.constant 0 : index
      %117 = vector.load %arg1[%c0_64, %c0_65] : memref<8x1xi32, #tpu.memory_space<vmem>>, vector<8x1xi32>
      %118 = tpu.iota {dimensions = array<i32: 1>} : vector<8x100xi32>
      %119 = vector.broadcast %117 : vector<8x1xi32> to vector<8x100xi32>
      %120 = arith.cmpi eq, %118, %119 : vector<8x100xi32>
      %121 = arith.extui %120 : vector<8x100xi1> to vector<8x100xi32>
      %122 = arith.sitofp %121 : vector<8x100xi32> to vector<8x100xf32>
      %c0_66 = arith.constant 0 : index
      %c0_67 = arith.constant 0 : index
      %123 = vector.load %arg2[%c0_66, %c0_67] : memref<100x32xf32, #tpu.memory_space<vmem>>, vector<100x32xf32>
      %cst_68 = arith.constant dense<0.000000e+00> : vector<8x32xf32>
      %124 = tpu.matmul %122, %123, %cst_68 {dimension_numbers = #tpu.dot_dimension_numbers<[1], [0], [0], [1], [0, 0, 1, 1], [], []>} : vector<8x100xf32>, vector<100x32xf32>, vector<8x32xf32> -> vector<8x32xf32>
      %c0_69 = arith.constant 0 : index
      %c0_70 = arith.constant 0 : index
      %125 = vector.load %arg3[%c0_69, %c0_70] : memref<8x32xf32, #tpu.memory_space<vmem>>, vector<8x32xf32>
      %126 = arith.addf %124, %125 : vector<8x32xf32>
      %c0_71 = arith.constant 0 : index
      %c0_72 = arith.constant 0 : index
      %127 = vector.load %arg16[%c0_71, %c0_72] : memref<8x32xf32, #tpu.memory_space<vmem>>, vector<8x32xf32>
      tpu.vector_store %arg16[%c0_71, %c0_72], %126 {strides = array<i32>} : memref<8x32xf32, #tpu.memory_space<vmem>>, vector<8x32xf32>,
    } else {
    }
    %c0 = arith.constant 0 : index
    %c0_1 = arith.constant 0 : index
    %3 = vector.load %arg16[%c0, %c0_1] : memref<8x32xf32, #tpu.memory_space<vmem>>, vector<8x32xf32>
    %c0_2 = arith.constant 0 : index
    %c0_3 = arith.constant 0 : index
    %c0_4 = arith.constant 0 : index
    %4 = vector.load %arg4[%c0_2, %c0_3, %c0_4] : memref<1x1x32xf32, #tpu.memory_space<vmem>>, vector<1x1x32xf32>
    %5 = vector.shape_cast %4 : vector<1x1x32xf32> to vector<1x32xf32>
    %c0_5 = arith.constant 0 : index
    %c0_6 = arith.constant 0 : index
    %c0_7 = arith.constant 0 : index
    %6 = vector.load %arg5[%c0_5, %c0_6, %c0_7] : memref<1x1x32xf32, #tpu.memory_space<vmem>>, vector<1x1x32xf32>
    %7 = vector.shape_cast %6 : vector<1x1x32xf32> to vector<1x32xf32>
    %cst = arith.constant dense<0.000000e+00> : vector<8xf32>
    %8 = vector.multi_reduction <add>, %3, %cst [1] : vector<8x32xf32> to vector<8xf32>
    %9 = vector.shape_cast %8 : vector<8xf32> to vector<8x1xf32>
    %cst_8 = arith.constant 3.200000e+01 : f32
    %10 = vector.broadcast %cst_8 : f32 to vector<8x1xf32>
    %11 = arith.divf %9, %10 : vector<8x1xf32>
    %12 = vector.broadcast %11 : vector<8x1xf32> to vector<8x32xf32>
    %13 = arith.subf %3, %12 : vector<8x32xf32>
    %14 = arith.mulf %13, %13 : vector<8x32xf32>
    %cst_9 = arith.constant dense<0.000000e+00> : vector<8xf32>
    %15 = vector.multi_reduction <add>, %14, %cst_9 [1] : vector<8x32xf32> to vector<8xf32>
    %16 = vector.shape_cast %15 : vector<8xf32> to vector<8x1xf32>
    %cst_10 = arith.constant 3.200000e+01 : f32
    %17 = vector.broadcast %cst_10 : f32 to vector<8x1xf32>
    %18 = arith.divf %16, %17 : vector<8x1xf32>
    %cst_11 = arith.constant 9.99999974E-6 : f32
    %19 = vector.broadcast %cst_11 : f32 to vector<8x1xf32>
    %20 = arith.addf %18, %19 : vector<8x1xf32>
    %21 = math.rsqrt %20 : vector<8x1xf32>
    %22 = vector.broadcast %21 : vector<8x1xf32> to vector<8x32xf32>
    %23 = arith.mulf %13, %22 : vector<8x32xf32>
    %24 = vector.broadcast %5 : vector<1x32xf32> to vector<8x32xf32>
    %25 = arith.mulf %23, %24 : vector<8x32xf32>
    %26 = vector.broadcast %7 : vector<1x32xf32> to vector<8x32xf32>
    %27 = arith.addf %25, %26 : vector<8x32xf32>
    %28 = arith.truncf %27 : vector<8x32xf32> to vector<8x32xbf16>
    %29 = vector.shape_cast %28 : vector<8x32xbf16> to vector<1x8x32xbf16>
    %30 = vector.broadcast %29 : vector<1x8x32xbf16> to vector<12x8x32xbf16>
    %c0_12 = arith.constant 0 : index
    %c0_13 = arith.constant 0 : index
    %c0_14 = arith.constant 0 : index
    %c0_15 = arith.constant 0 : index
    %31 = vector.load %arg6[%c0_12, %c0_13, %c0_14, %c0_15] : memref<1x12x32x8xbf16, #tpu.memory_space<vmem>>, vector<1x12x32x8xbf16>
    %32 = vector.shape_cast %31 : vector<1x12x32x8xbf16> to vector<12x32x8xbf16>
    "tpu.trace_start"() <{level = 10 : i32, message = "gsd,gde->gse"}> : () -> ()
    %cst_16 = arith.constant dense<0.000000e+00> : vector<12x8x8xf32>
    %33 = tpu.matmul %30, %32, %cst_16 {dimension_numbers = #tpu.dot_dimension_numbers<[2], [1], [1], [2], [0, 0, 0, 1, 1, 2], [0], [0]>} : vector<12x8x32xbf16>, vector<12x32x8xbf16>, vector<12x8x8xf32> -> vector<12x8x8xf32>
    "tpu.trace_stop"() : () -> ()
    %c0_17 = arith.constant 0 : index
    %c0_18 = arith.constant 0 : index
    %c0_19 = arith.constant 0 : index
    %c0_20 = arith.constant 0 : index
    %34 = vector.load %arg7[%c0_17, %c0_18, %c0_19, %c0_20] : memref<1x12x1x8xf32, #tpu.memory_space<vmem>>, vector<1x12x1x8xf32>
    %35 = vector.shape_cast %34 : vector<1x12x1x8xf32> to vector<12x1x8xf32>
    %36 = vector.broadcast %35 : vector<12x1x8xf32> to vector<12x8x8xf32>
    %37 = arith.addf %33, %36 : vector<12x8x8xf32>
    %38 = vector.extract_strided_slice %37 {offsets = [0, 0, 0], sizes = [4, 8, 8], strides = [1, 1, 1]} : vector<12x8x8xf32> to vector<4x8x8xf32>
    %39 = vector.extract_strided_slice %37 {offsets = [4, 0, 0], sizes = [4, 8, 8], strides = [1, 1, 1]} : vector<12x8x8xf32> to vector<4x8x8xf32>
    %40 = vector.extract_strided_slice %37 {offsets = [8, 0, 0], sizes = [4, 8, 8], strides = [1, 1, 1]} : vector<12x8x8xf32> to vector<4x8x8xf32>
    %41 = arith.truncf %38 : vector<4x8x8xf32> to vector<4x8x8xbf16>
    %42 = arith.truncf %39 : vector<4x8x8xf32> to vector<4x8x8xbf16>
    "tpu.trace_start"() <{level = 10 : i32, message = "hqd,hkd->hqk"}> : () -> ()
    %cst_21 = arith.constant dense<0.000000e+00> : vector<4x8x8xf32>
    %43 = tpu.matmul %41, %42, %cst_21 {dimension_numbers = #tpu.dot_dimension_numbers<[2], [2], [1], [1], [0, 0, 0, 1, 1, 1], [0], [0]>} : vector<4x8x8xbf16>, vector<4x8x8xbf16>, vector<4x8x8xf32> -> vector<4x8x8xf32>
    "tpu.trace_stop"() : () -> ()
    %cst_22 = arith.constant dense<0xFF800000> : vector<4x8xf32>
    %44 = vector.multi_reduction <maximumf>, %43, %cst_22 [2] : vector<4x8x8xf32> to vector<4x8xf32>
    %45 = vector.shape_cast %44 : vector<4x8xf32> to vector<4x8x1xf32>
    %46 = vector.broadcast %45 : vector<4x8x1xf32> to vector<4x8x8xf32>
    %47 = arith.subf %43, %46 : vector<4x8x8xf32>
    %48 = math.exp %47 : vector<4x8x8xf32>
    %cst_23 = arith.constant dense<0.000000e+00> : vector<4x8xf32>
    %49 = vector.multi_reduction <add>, %48, %cst_23 [2] : vector<4x8x8xf32> to vector<4x8xf32>
    %50 = vector.shape_cast %49 : vector<4x8xf32> to vector<4x8x1xf32>
    %51 = tpu.reciprocal %50 {approx = true} : vector<4x8x1xf32> -> vector<4x8x1xf32>
    %52 = vector.broadcast %51 : vector<4x8x1xf32> to vector<4x8x8xf32>
    %53 = arith.mulf %48, %52 : vector<4x8x8xf32>
    %54 = arith.truncf %53 : vector<4x8x8xf32> to vector<4x8x8xbf16>
    %55 = arith.truncf %40 : vector<4x8x8xf32> to vector<4x8x8xbf16>
    "tpu.trace_start"() <{level = 10 : i32, message = "hqk,hkd->hqd"}> : () -> ()
    %cst_24 = arith.constant dense<0.000000e+00> : vector<4x8x8xf32>
    %56 = tpu.matmul %54, %55, %cst_24 {dimension_numbers = #tpu.dot_dimension_numbers<[2], [1], [1], [2], [0, 0, 0, 1, 1, 2], [0], [0]>} : vector<4x8x8xbf16>, vector<4x8x8xbf16>, vector<4x8x8xf32> -> vector<4x8x8xf32>
    "tpu.trace_stop"() : () -> ()
    %57 = arith.truncf %56 : vector<4x8x8xf32> to vector<4x8x8xbf16>
    %c0_25 = arith.constant 0 : index
    %c0_26 = arith.constant 0 : index
    %c0_27 = arith.constant 0 : index
    %c0_28 = arith.constant 0 : index
    %58 = vector.load %arg8[%c0_25, %c0_26, %c0_27, %c0_28] : memref<1x4x8x32xbf16, #tpu.memory_space<vmem>>, vector<1x4x8x32xbf16>
    %59 = vector.shape_cast %58 : vector<1x4x8x32xbf16> to vector<4x8x32xbf16>
    "tpu.trace_start"() <{level = 10 : i32, message = "hsd,hde->hse"}> : () -> ()
    %cst_29 = arith.constant dense<0.000000e+00> : vector<4x8x32xf32>
    %60 = tpu.matmul %57, %59, %cst_29 {dimension_numbers = #tpu.dot_dimension_numbers<[2], [1], [1], [2], [0, 0, 0, 1, 1, 2], [0], [0]>} : vector<4x8x8xbf16>, vector<4x8x32xbf16>, vector<4x8x32xf32> -> vector<4x8x32xf32>
    "tpu.trace_stop"() : () -> ()
    %cst_30 = arith.constant dense<0.000000e+00> : vector<8x32xf32>
    %61 = vector.multi_reduction <add>, %60, %cst_30 [0] : vector<4x8x32xf32> to vector<8x32xf32>
    %62 = arith.addf %3, %61 : vector<8x32xf32>
    %c0_31 = arith.constant 0 : index
    %c0_32 = arith.constant 0 : index
    %c0_33 = arith.constant 0 : index
    %63 = vector.load %arg9[%c0_31, %c0_32, %c0_33] : memref<1x1x32xf32, #tpu.memory_space<vmem>>, vector<1x1x32xf32>
    %64 = vector.shape_cast %63 : vector<1x1x32xf32> to vector<1x32xf32>
    %65 = vector.broadcast %64 : vector<1x32xf32> to vector<8x32xf32>
    %66 = arith.addf %62, %65 : vector<8x32xf32>
    %c0_34 = arith.constant 0 : index
    %c0_35 = arith.constant 0 : index
    %c0_36 = arith.constant 0 : index
    %67 = vector.load %arg10[%c0_34, %c0_35, %c0_36] : memref<1x1x32xf32, #tpu.memory_space<vmem>>, vector<1x1x32xf32>
    %68 = vector.shape_cast %67 : vector<1x1x32xf32> to vector<1x32xf32>
    %c0_37 = arith.constant 0 : index
    %c0_38 = arith.constant 0 : index
    %c0_39 = arith.constant 0 : index
    %69 = vector.load %arg11[%c0_37, %c0_38, %c0_39] : memref<1x1x32xf32, #tpu.memory_space<vmem>>, vector<1x1x32xf32>
    %70 = vector.shape_cast %69 : vector<1x1x32xf32> to vector<1x32xf32>
    %cst_40 = arith.constant dense<0.000000e+00> : vector<8xf32>
    %71 = vector.multi_reduction <add>, %66, %cst_40 [1] : vector<8x32xf32> to vector<8xf32>
    %72 = vector.shape_cast %71 : vector<8xf32> to vector<8x1xf32>
    %cst_41 = arith.constant 3.200000e+01 : f32
    %73 = vector.broadcast %cst_41 : f32 to vector<8x1xf32>
    %74 = arith.divf %72, %73 : vector<8x1xf32>
    %75 = vector.broadcast %74 : vector<8x1xf32> to vector<8x32xf32>
    %76 = arith.subf %66, %75 : vector<8x32xf32>
    %77 = arith.mulf %76, %76 : vector<8x32xf32>
    %cst_42 = arith.constant dense<0.000000e+00> : vector<8xf32>
    %78 = vector.multi_reduction <add>, %77, %cst_42 [1] : vector<8x32xf32> to vector<8xf32>
    %79 = vector.shape_cast %78 : vector<8xf32> to vector<8x1xf32>
    %cst_43 = arith.constant 3.200000e+01 : f32
    %80 = vector.broadcast %cst_43 : f32 to vector<8x1xf32>
    %81 = arith.divf %79, %80 : vector<8x1xf32>
    %cst_44 = arith.constant 9.99999974E-6 : f32
    %82 = vector.broadcast %cst_44 : f32 to vector<8x1xf32>
    %83 = arith.addf %81, %82 : vector<8x1xf32>
    %84 = math.rsqrt %83 : vector<8x1xf32>
    %85 = vector.broadcast %84 : vector<8x1xf32> to vector<8x32xf32>
    %86 = arith.mulf %76, %85 : vector<8x32xf32>
    %87 = vector.broadcast %68 : vector<1x32xf32> to vector<8x32xf32>
    %88 = arith.mulf %86, %87 : vector<8x32xf32>
    %89 = vector.broadcast %70 : vector<1x32xf32> to vector<8x32xf32>
    %90 = arith.addf %88, %89 : vector<8x32xf32>
    %91 = arith.truncf %90 : vector<8x32xf32> to vector<8x32xbf16>
    %c0_45 = arith.constant 0 : index
    %c0_46 = arith.constant 0 : index
    %c0_47 = arith.constant 0 : index
    %92 = vector.load %arg12[%c0_45, %c0_46, %c0_47] : memref<1x32x128xbf16, #tpu.memory_space<vmem>>, vector<1x32x128xbf16>
    %93 = vector.shape_cast %92 : vector<1x32x128xbf16> to vector<32x128xbf16>
    %cst_48 = arith.constant dense<0.000000e+00> : vector<8x128xf32>
    %94 = tpu.matmul %91, %93, %cst_48 {dimension_numbers = #tpu.dot_dimension_numbers<[1], [0], [0], [1], [0, 0, 1, 1], [], []>} : vector<8x32xbf16>, vector<32x128xbf16>, vector<8x128xf32> -> vector<8x128xf32>
    %c0_49 = arith.constant 0 : index
    %c0_50 = arith.constant 0 : index
    %c0_51 = arith.constant 0 : index
    %95 = vector.load %arg13[%c0_49, %c0_50, %c0_51] : memref<1x1x128xf32, #tpu.memory_space<vmem>>, vector<1x1x128xf32>
    %96 = vector.shape_cast %95 : vector<1x1x128xf32> to vector<1x128xf32>
    %97 = vector.broadcast %96 : vector<1x128xf32> to vector<8x128xf32>
    %98 = arith.addf %94, %97 : vector<8x128xf32>
    %cst_52 = arith.constant 5.000000e-01 : f32
    %99 = vector.broadcast %cst_52 : f32 to vector<8x128xf32>
    %100 = arith.mulf %99, %98 : vector<8x128xf32>
    %cst_53 = arith.constant 0.707106769 : f32
    %101 = vector.broadcast %cst_53 : f32 to vector<8x128xf32>
    %102 = arith.mulf %98, %101 : vector<8x128xf32>
    %103 = math.erf %102 : vector<8x128xf32>
    %cst_54 = arith.constant 1.000000e+00 : f32
    %104 = vector.broadcast %cst_54 : f32 to vector<8x128xf32>
    %105 = arith.addf %104, %103 : vector<8x128xf32>
    %106 = arith.mulf %100, %105 : vector<8x128xf32>
    %107 = arith.truncf %106 : vector<8x128xf32> to vector<8x128xbf16>
    %c0_55 = arith.constant 0 : index
    %c0_56 = arith.constant 0 : index
    %c0_57 = arith.constant 0 : index
    %108 = vector.load %arg14[%c0_55, %c0_56, %c0_57] : memref<1x128x32xbf16, #tpu.memory_space<vmem>>, vector<1x128x32xbf16>
    %109 = vector.shape_cast %108 : vector<1x128x32xbf16> to vector<128x32xbf16>
    %cst_58 = arith.constant dense<0.000000e+00> : vector<8x32xf32>
    %110 = tpu.matmul %107, %109, %cst_58 {dimension_numbers = #tpu.dot_dimension_numbers<[1], [0], [0], [1], [0, 0, 1, 1], [], []>} : vector<8x128xbf16>, vector<128x32xbf16>, vector<8x32xf32> -> vector<8x32xf32>
    %c0_59 = arith.constant 0 : index
    %c0_60 = arith.constant 0 : index
    %c0_61 = arith.constant 0 : index
    %111 = vector.load %arg15[%c0_59, %c0_60, %c0_61] : memref<1x1x32xf32, #tpu.memory_space<vmem>>, vector<1x1x32xf32>
    %112 = vector.shape_cast %111 : vector<1x1x32xf32> to vector<1x32xf32>
    %113 = vector.broadcast %112 : vector<1x32xf32> to vector<8x32xf32>
    %114 = arith.addf %110, %113 : vector<8x32xf32>
    %115 = arith.addf %66, %114 : vector<8x32xf32>
    %c0_62 = arith.constant 0 : index
    %c0_63 = arith.constant 0 : index
    %116 = vector.load %arg16[%c0_62, %c0_63] : memref<8x32xf32, #tpu.memory_space<vmem>>, vector<8x32xf32>
    tpu.vector_store %arg16[%c0_62, %c0_63], %115 {strides = array<i32>} : memref<8x32xf32, #tpu.memory_space<vmem>>, vector<8x32xf32>,
    return
  }
  func.func @transform_0(%arg0: i32) -> (i32, i32) {
    %c0_i32 = arith.constant 0 : i32
    %c0_i32_0 = arith.constant 0 : i32
    %c0_i32_1 = arith.constant 0 : i32
    return %c0_i32, %c0_i32_0 : i32, i32
  }
  func.func @transform_1(%arg0: i32) -> (i32, i32) {
    %c0_i32 = arith.constant 0 : i32
    %c0_i32_0 = arith.constant 0 : i32
    %c0_i32_1 = arith.constant 0 : i32
    return %c0_i32, %c0_i32_0 : i32, i32
  }
  func.func @transform_2(%arg0: i32) -> (i32, i32) {
    %c0_i32 = arith.constant 0 : i32
    %c0_i32_0 = arith.constant 0 : i32
    %c0_i32_1 = arith.constant 0 : i32
    return %c0_i32, %c0_i32_0 : i32, i32
  }
  func.func @transform_3(%arg0: i32) -> (i32, i32, i32) {
    %c0_i32 = arith.constant 0 : i32
    %c0_i32_0 = arith.constant 0 : i32
    %c0_i32_1 = arith.constant 0 : i32
    return %arg0, %c0_i32, %c0_i32_0 : i32, i32, i32
  }
  func.func @transform_4(%arg0: i32) -> (i32, i32, i32) {
    %c0_i32 = arith.constant 0 : i32
    %c0_i32_0 = arith.constant 0 : i32
    %c0_i32_1 = arith.constant 0 : i32
    return %arg0, %c0_i32, %c0_i32_0 : i32, i32, i32
  }
  func.func @transform_5(%arg0: i32) -> (i32, i32, i32, i32) {
    %c0_i32 = arith.constant 0 : i32
    %c0_i32_0 = arith.constant 0 : i32
    %c0_i32_1 = arith.constant 0 : i32
    %c0_i32_2 = arith.constant 0 : i32
    return %arg0, %c0_i32, %c0_i32_0, %c0_i32_1 : i32, i32, i32, i32
  }
  func.func @transform_6(%arg0: i32) -> (i32, i32, i32, i32) {
    %c0_i32 = arith.constant 0 : i32
    %c0_i32_0 = arith.constant 0 : i32
    %c0_i32_1 = arith.constant 0 : i32
    %c0_i32_2 = arith.constant 0 : i32
    return %arg0, %c0_i32, %c0_i32_0, %c0_i32_1 : i32, i32, i32, i32
  }
  func.func @transform_7(%arg0: i32) -> (i32, i32, i32, i32) {
    %c0_i32 = arith.constant 0 : i32
    %c0_i32_0 = arith.constant 0 : i32
    %c0_i32_1 = arith.constant 0 : i32
    %c0_i32_2 = arith.constant 0 : i32
    return %arg0, %c0_i32, %c0_i32_0, %c0_i32_1 : i32, i32, i32, i32
  }
  func.func @transform_8(%arg0: i32) -> (i32, i32, i32) {
    %c0_i32 = arith.constant 0 : i32
    %c0_i32_0 = arith.constant 0 : i32
    %c0_i32_1 = arith.constant 0 : i32
    return %arg0, %c0_i32, %c0_i32_0 : i32, i32, i32
  }
  func.func @transform_9(%arg0: i32) -> (i32, i32, i32) {
    %c0_i32 = arith.constant 0 : i32
    %c0_i32_0 = arith.constant 0 : i32
    %c0_i32_1 = arith.constant 0 : i32
    return %arg0, %c0_i32, %c0_i32_0 : i32, i32, i32
  }
  func.func @transform_10(%arg0: i32) -> (i32, i32, i32) {
    %c0_i32 = arith.constant 0 : i32
    %c0_i32_0 = arith.constant 0 : i32
    %c0_i32_1 = arith.constant 0 : i32
    return %arg0, %c0_i32, %c0_i32_0 : i32, i32, i32
  }
  func.func @transform_11(%arg0: i32) -> (i32, i32, i32) {
    %c0_i32 = arith.constant 0 : i32
    %c0_i32_0 = arith.constant 0 : i32
    %c0_i32_1 = arith.constant 0 : i32
    return %arg0, %c0_i32, %c0_i32_0 : i32, i32, i32
  }
  func.func @transform_12(%arg0: i32) -> (i32, i32, i32) {
    %c0_i32 = arith.constant 0 : i32
    %c0_i32_0 = arith.constant 0 : i32
    %c0_i32_1 = arith.constant 0 : i32
    return %arg0, %c0_i32, %c0_i32_0 : i32, i32, i32
  }
  func.func @transform_13(%arg0: i32) -> (i32, i32, i32) {
    %c0_i32 = arith.constant 0 : i32
    %c0_i32_0 = arith.constant 0 : i32
    %c0_i32_1 = arith.constant 0 : i32
    return %arg0, %c0_i32, %c0_i32_0 : i32, i32, i32
  }
  func.func @transform_14(%arg0: i32) -> (i32, i32, i32) {
    %c0_i32 = arith.constant 0 : i32
    %c0_i32_0 = arith.constant 0 : i32
    %c0_i32_1 = arith.constant 0 : i32
    return %arg0, %c0_i32, %c0_i32_0 : i32, i32, i32
  }
  func.func @transform_15(%arg0: i32) -> (i32, i32) {
    %c0_i32 = arith.constant 0 : i32
    %c0_i32_0 = arith.constant 0 : i32
    %c0_i32_1 = arith.constant 0 : i32
    return %c0_i32, %c0_i32_0 : i32, i32
  }
}

</mosaic_0001>

<bundles_post_ra>
// kernel: transformer_forward.1
= control target key start
LH: loop header
LB: loop body
LE: loop exit
PB: predicated region body
PF: predicated region fallthrough
CT: control target
= control target key end

     0   :  { %s3580_s0 = inlined_call_operand.vmem [shape: s32[8,1], index: 0, kind: input, shape index: {}]   ;;  %s3581_s1 = inlined_call_operand.vmem [shape: f32[100,32], index: 1, kind: input, shape index: {}]   ;;  %s3582_s2 = inlined_call_operand.vmem [shape: f32[8,32], index: 2, kind: input, shape index: {}]   ;;  %s3583_s3 = inlined_call_operand.vmem [shape: f32[2,1,32], index: 3, kind: input, shape index: {}]   ;;  %s3584_s4 = inlined_call_operand.vmem [shape: f32[2,1,32], index: 4, kind: input, shape index: {}]   ;;  %s3585_s5 = inlined_call_operand.vmem [shape: bf16[2,12,32,8], index: 5, kind: input, shape index: {}]   ;;  %s3586_s6 = inlined_call_operand.vmem [shape: f32[2,12,1,8], index: 6, kind: input, shape index: {}]   ;;  %s3587_s7 = inlined_call_operand.vmem [shape: bf16[2,4,8,32], index: 7, kind: input, shape index: {}]   ;;  %s3588_s8 = inlined_call_operand.vmem [shape: f32[2,1,32], index: 8, kind: input, shape index: {}]   ;;  %s3589_s9 = inlined_call_operand.vmem [shape: f32[2,1,32], index: 9, kind: input, shape index: {}]   ;;  %s3590_s10 = inlined_call_operand.vmem [shape: f32[2,1,32], index: 10, kind: input, shape index: {}]   ;;  %s3591_s11 = inlined_call_operand.vmem [shape: bf16[2,32,128], index: 11, kind: input, shape index: {}]   ;;  %s3592_s12 = inlined_call_operand.vmem [shape: f32[2,1,128], index: 12, kind: input, shape index: {}]   ;;  %s3593_s13 = inlined_call_operand.vmem [shape: bf16[2,128,32], index: 13, kind: input, shape index: {}]   ;;  %s3594_s14 = inlined_call_operand.vmem [shape: f32[2,1,32], index: 14, kind: input, shape index: {}]   ;;  %s3595_s15 = inlined_call_operand.hbm [shape: f32[8,32], index: 15, kind: output, shape index: {}]  }
   0x1   :  { %3598 = sst [smem:[#allocation7_spill]] %s3582_s2 }
   0x2   :  { %3599 = sst [smem:[#allocation8_spill]] %s3583_s3 }
   0x3   :  { %3600 = sst [smem:[#allocation9_spill]] %s3584_s4 }
   0x4   :  { %3601 = sst [smem:[#allocation10_spill]] %s3585_s5 }
   0x5   :  { %3602 = sst [smem:[#allocation11_spill]] %s3587_s7 }
   0x6   :  { %3603 = sst [smem:[#allocation12_spill]] %s3595_s15 }
   0x7   :  { %20 = vsyncpa [#allocation3], 0  ;;  %s3178_s18 = smov 0  }
   0x8 LB: > { %3604 = sst [smem:[#allocation5_spill]] %s3090_s18  ;;  %s3184_s19 = sadd.s32 4294967295, %s3090_s18   ;;  %s3090_s18 = sphi %s3178_s18, %s26_s18  }
   0x9   : > { %p2569_p0 = scmp.ge.s32.totalorder %s3090_s18, 1  ;;  %p528_p1 = scmp.lt.s32.totalorder %s3090_s18, 3 }
   0xb   : > { %p529_p2 = pnand %p2569_p0, %p528_p1 }
   0xd   : > { %532 = sbr.rel (%p529_p2) target bundleno = 2554 (0x9fa), region = 80 }
  0x12   : > { %p611_p3 = scmp.lt.s32.totalorder %s3184_s19, 1  ;;  %s3607_s7 = sld [smem:[#allocation11_spill]] }
  0x13   : > { %s3609_s5 = sld [smem:[#allocation10_spill]]  ;;  %p2577_p4 = scmp.ne.s32.totalorder %s3184_s19, 0 }
  0x14   : > { %s3190_s20 = scalar_select %p611_p3, %s3184_s19, 1 }
  0x15   : > { %s3610_s24 = sld [smem:[#allocation7_spill]] (!%p2577_p4) }
  0x16   : > { %s2977_s27 = smul.u32 192, %s3190_s20  ;;  %s2663_s28 = sshll.u32 %s3190_s20, 4 }
  0x17   : > { %s2978_s29 = smul.u32 12, %s3190_s20  ;;  %s636_s30 = scalar_lea.vmem %s3589_s9, %s3190_s20 }
  0x18   : > { %s3206_s17 = scalar_lea.vmem %s3607_s7, %s2663_s28  ;;  %s3233_s22 = scalar_lea.vmem %s3591_s11, %s2663_s28 }
  0x19   : > { %3608 = sst [smem:[#allocation6_spill]] %s3206_s17  ;;  %s3211_s18 = scalar_lea.vmem %s3609_s5, %s2977_s27 }
  0x1a   : > { %s3220_s25 = scalar_lea.vmem %s3586_s6, %s2978_s29  ;;  %s639_s17 = scalar_lea.vmem %s3590_s10, %s3190_s20 }
  0x1b   : > { %s647_s23 = scalar_lea.vmem %s3592_s12, %s3190_s20  ;;  %s2665_s3 = sshll.u32 %s3190_s20, 6 }
  0x1c   : > { %s3243_s5 = scalar_lea.vmem %s3593_s13, %s2665_s3  ;;  %s655_s7 = scalar_lea.vmem %s3594_s14, %s3190_s20 }
  0x1d   : > { %660 = sbr.rel (%p2577_p4) target bundleno = 358 (0x166), region = 84 }
  0x22   : > { %v661_v0 = vld [vmem:[%s3580_s0] sm:$0xff]  ;;  %vm688_vm0 = vcmask 1043456   ;;  %v3092_v2 = vmov 0   ;;  %v3093_v3 = vmov 0.0   ;;  %v681_v4 = vld [vmem:[%s3581_s1 + $0x58] sm:$0xff]  ;;  %v680_v5 = vld [vmem:[%s3581_s1 + $0x50] sm:$0xff]  ;;  %v662_v16 = vlaneseq }
  0x23   : > { %v682_v1 = vld [vmem:[%s3581_s1 + $0x60] sm:$0xf]  ;;  %2999 = vset.pattern.permute.xlu0 %v3092_v2  ;;  %2752 = vmatprep.subr.mxu0 %v3093_v3  ;;  %vm3094_vm1 = vmmov 0   ;;  %v679_v6 = vld [vmem:[%s3581_s1 + $0x48] sm:$0xff]  ;;  %v677_v8 = vld [vmem:[%s3581_s1 + $0x38] sm:$0xff]  ;;  %vm684_vm2 = vcmask 818176  }
  0x24   : > { %665 = vperm.xlu0 %2999, %v661_v0   ;;  %2753 = vmatpush3.msk.msra.mxu0 %vm688_vm0, %v682_v1  ;;  %v678_v7 = vld [vmem:[%s3581_s1 + $0x40] sm:$0xff]  ;;  %v676_v9 = vld [vmem:[%s3581_s1 + $0x30] sm:$0xff]  ;;  %v675_v10 = vld [vmem:[%s3581_s1 + $0x28] sm:$0xff]  ;;  %v663_v17 = vand.u32 127, %v662_v16  ;;  %vm762_vm4 = vcmask 261120  }
  0x25   : > { %2754 = vmatprep.subr.mxu0 %v3093_v3  ;;  %2778 = vmatprep.mubr.msk.f32.mxu0 %vm3094_vm1, %v3093_v3  ;;  %v674_v11 = vld [vmem:[%s3581_s1 + $0x20] sm:$0xff]  ;;  %v673_v12 = vld [vmem:[%s3581_s1 + $0x18] sm:$0xff]  ;;  %v672_v13 = vld [vmem:[%s3581_s1 + $0x10] sm:$0xff] }
  0x26   : > { %2755 = vmatpush3.msra.mxu0 %v681_v4  ;;  %v671_v14 = vld [vmem:[%s3581_s1 + $0x8] sm:$0xff]  ;;  %v670_v15 = vld [vmem:[%s3581_s1] sm:$0xff] }
  0x27   : > { %2756 = vmatprep.subr.mxu0 %v3093_v3  ;;  %v683_v20 = vld [vmem:[%s3610_s24] sm:$0xff] }
  0x28   : > { %2757 = vmatpush3.msra.mxu0 %v680_v5 }
  0x29   : > { %2758 = vmatprep.subr.mxu0 %v3093_v3 }
  0x2a   : > { %2759 = vmatpush3.msra.mxu0 %v679_v6 }
  0x2b   : > { %2760 = vmatprep.subr.mxu0 %v3093_v3 }
  0x2c   : > { %2761 = vmatpush3.msra.mxu0 %v678_v7 }
  0x2d   : > { %2762 = vmatprep.subr.mxu0 %v3093_v3 }
  0x2e   : > { %2763 = vmatpush3.msra.mxu0 %v677_v8 }
  0x2f   : > { %2764 = vmatprep.subr.mxu0 %v3093_v3 }
  0x30   : > { %2765 = vmatpush3.msra.mxu0 %v676_v9 }
  0x31   : > { %2766 = vmatprep.subr.mxu0 %v3093_v3 }
  0x32   : > { %2767 = vmatpush3.msra.mxu0 %v675_v10 }
  0x33   : > { %2768 = vmatprep.subr.mxu0 %v3093_v3 }
  0x34   : > { %2769 = vmatpush3.msra.mxu0 %v674_v11 }
  0x35   : > { %2770 = vmatprep.subr.mxu0 %v3093_v3 }
  0x36   : > { %2771 = vmatpush3.msra.mxu0 %v673_v12 }
  0x37   : > { %2772 = vmatprep.subr.mxu0 %v3093_v3 }
  0x38   : > { %2773 = vmatpush3.msra.mxu0 %v672_v13 }
  0x39   : > { %2774 = vmatprep.subr.mxu0 %v3093_v3 }
  0x3a   : > { %2775 = vmatpush3.msra.mxu0 %v671_v14 }
  0x3b   : > { %2776 = vmatprep.subr.mxu0 %v3093_v3 }
  0x3c   : > { %2777 = vmatpush3.msra.mxu0 %v670_v15 }
  0x9f   : > { %v666_v18 = vpop.permute.xlu0 %665 }
  0xa0   : > { %vm667_vm3 = vcmp.eq.s32.totalorder %v663_v17, %v666_v18 }
  0xa1   : > { %v2578_v19 = vsel %vm667_vm3, 1.0, %v3093_v3 }
  0xa2   : > { %2779 = vmatmul.mubr.msk.f32.vlgmr.msra.gmra.mxu0 %vm684_vm2, %v2578_v19 }
 0x162   : > { %v758_v21 = vpop.f32.mrf.mxu0 }
 0x163   : > { %v759_v22 = vadd.f32 %v758_v21, %v683_v20 }
 0x164   : > { %v2780_v23 = vpop.f32.mrf.mxu0 }
 0x165   : > { %763 = vst.msk [vmem:[#allocation2] sm:$0xff] %vm762_vm4, %v759_v22 }
 0x166 PF: > { %vm767_vm5 = vcmask 261120   ;;  %v3000_v31 = vld [vmem:[%s3211_s18 + $0x8] sm:$0xff]   ;;  %v3001_v32 = vld [vmem:[%s3211_s18 + $0x38] sm:$0xff]   ;;  %v3095_v33 = vmov 0.0   ;;  %v3002_v34 = vld [vmem:[%s3211_s18] sm:$0xff]   ;;  %vm3096_vm6 = vmmov 0   ;;  %s3616_s29 = scalar_lea.vmem %s3588_s8, %s3190_s20 }
 0x167   : > { %2781 = vmatprep.subr.bf16.mxu0 %v3095_v33  ;;  %2805 = vmatprep.subr.bf16.mxu1 %v3095_v33  ;;  %v3003_v35 = vld [vmem:[%s3211_s18 + $0x30] sm:$0xff]   ;;  %s3611_s16 = sld [smem:[#allocation8_spill]]  ;;  %v3004_v45 = vld [vmem:[%s3211_s18 + $0x18] sm:$0xff]   ;;  %v3008_v50 = vld [vmem:[%s3211_s18 + $0x28] sm:$0xff]   ;;  %vm1564_vm7 = vcmask 64512   ;;  %vm1804_vm8 = vcmask 1043456  }
 0x168   : > { %2782 = vmatpush3.bf16.msra.mxu0 %v3000_v31  ;;  %2806 = vmatpush3.bf16.msra.mxu1 %v3001_v32  ;;  %s3613_s2 = sld [smem:[#allocation9_spill]]  ;;  %v3005_v46 = vld [vmem:[%s3211_s18 + $0x58] sm:$0xff]   ;;  %v3006_v48 = vld [vmem:[%s3211_s18 + $0x10] sm:$0xff]   ;;  %v3010_v52 = vld [vmem:[%s3211_s18 + $0x20] sm:$0xff]   ;;  %p2983_p5 = scmp.eq.s32.totalorder %s3184_s19, 1 }
 0x169   : > { %2783 = vmatprep.subr.bf16.mxu0 %v3095_v33  ;;  %2807 = vmatprep.subr.bf16.mxu1 %v3095_v33  ;;  %v3007_v49 = vld [vmem:[%s3211_s18 + $0x50] sm:$0xff]   ;;  %v3009_v51 = vld [vmem:[%s3211_s18 + $0x78] sm:$0xff]   ;;  %v3012_v54 = vld [vmem:[%s3211_s18 + $0x48] sm:$0xff]  }
 0x16a   : > { %2785 = vmatprep.mubr.msk.bf16.mxu0 %vm3096_vm6, %v3095_v33  ;;  %2809 = vmatprep.mubr.msk.bf16.mxu1 %vm3096_vm6, %v3095_v33  ;;  %v3011_v53 = vld [vmem:[%s3211_s18 + $0x70] sm:$0xff]   ;;  %v3013_v55 = vld [vmem:[%s3211_s18 + $0x98] sm:$0xff]   ;;  %v3014_v56 = vld [vmem:[%s3211_s18 + $0x40] sm:$0xff]  }
 0x16b   : > { %v3015_v57 = vld [vmem:[%s3211_s18 + $0x90] sm:$0xff]   ;;  %v3016_v58 = vld [vmem:[%s3211_s18 + $0x68] sm:$0xff]   ;;  %v3017_v59 = vld [vmem:[%s3211_s18 + $0xb8] sm:$0xff]  }
 0x16c   : > { %v3295_v24 = vld [vmem:[#allocation2] sm:$0xff]  ;;  %2784 = vmatpush3.bf16.msra.mxu0 %v3002_v34  ;;  %2808 = vmatpush3.bf16.msra.mxu1 %v3003_v35  ;;  %v3019_v61 = vld [vmem:[%s3211_s18 + $0xb0] sm:$0xff]   ;;  %v3020_v62 = vld [vmem:[%s3211_s18 + $0x88] sm:$0xff]  }
 0x16d   : > { %v768_v25 = vsel %vm767_vm5, %v3295_v24, 0.0  ;;  %2789 = vmatprep.subr.bf16.mxu0 %v3095_v33  ;;  %2821 = vmatprep.subr.bf16.mxu1 %v3095_v33  ;;  %s3612_s28 = scalar_lea.vmem %s3611_s16, %s3190_s20  ;;  %v3018_v60 = vld [vmem:[%s3211_s18 + $0x60] sm:$0xff]   ;;  %v3022_v0 = vld [vmem:[%s3211_s18 + $0xa8] sm:$0xff]  }
 0x16e   : > { %769 = vadd.xlane.f32.xlu0 %v768_v25  ;;  %v2581_v40 = vld [vmem:[%s3612_s28] ss:$0 sm:$0xff]  ;;  %s3614_s15 = scalar_lea.vmem %s3613_s2, %s3190_s20  ;;  %v2588_v10 = vld [vmem:[%s3220_s25 + $0x5] ss:$0 sm:$0xff]  ;;  %v2584_v17 = vld [vmem:[%s3220_s25 + $0x1] ss:$0 sm:$0xff] }
 0x16f   : > { %v2582_v42 = vld [vmem:[%s3614_s15] ss:$0 sm:$0xff]  ;;  %v2590_v23 = vld [vmem:[%s3220_s25 + $0x7] ss:$0 sm:$0xff]  ;;  %v2586_v34 = vld [vmem:[%s3220_s25 + $0x3] ss:$0 sm:$0xff] }
 0x170   : > { %v3021_v63 = vld [vmem:[%s3211_s18 + $0x80] sm:$0xff]  }
 0x171   : > { %v3023_v1 = vld [vmem:[%s3211_s18 + $0xa0] sm:$0xff]   ;;  %s3615_s18 = sld [smem:[#allocation6_spill]] }
 0x1f7   : > { %v770_v26 = vpop.xlane.xlu0 %769 }
 0x1f8   : > { %v772_v27 = vmul.f32 0.03125, %v770_v26 }
 0x1fa   : > { %v773_v28 = vsub.f32 %v3295_v24, %v772_v27 }
 0x1fc   : > { %v774_v29 = vmul.f32 %v773_v28, %v773_v28 }
 0x1fe   : > { %v775_v30 = vsel %vm767_vm5, %v774_v29, 0.0 }
 0x1ff   : > { %776 = vadd.xlane.f32.xlu0 %v775_v30 }
 0x288   : > { %v777_v36 = vpop.xlane.xlu0 %776 }
 0x289   : > { %v778_v37 = vmul.f32 0.03125, %v777_v36 }
 0x28b   : > { %v779_v38 = vadd.f32 1e-05, %v778_v37 }
 0x28d   : > { %3034 = vrsqrt.f32 %v779_v38 }
 0x29a   : > { %v3035_v39 = vpop.eup %3034 }
 0x29b   : > { %v781_v41 = vmul.f32 %v3035_v39, %v773_v28 }
 0x29d   : > { %v788_v43 = vmul.f32 %v2581_v40, %v781_v41  ;;  %v2587_v40 = vld [vmem:[%s3220_s25 + $0x4] ss:$0 sm:$0xff]  ;;  %v2592_v41 = vld [vmem:[%s3220_s25 + $0x9] ss:$0 sm:$0xff] }
 0x29f   : > { %v795_v44 = vadd.f32 %v2582_v42, %v788_v43 }
 0x2a1   : > { %v3327_v47 = vpack.c.bf16 %v795_v44, %v795_v44 }
 0x2a3   : > { %2786 = vmatmul.mubr.msk.bf16.vlgmr.msra.gmra.mxu0 %vm767_vm5, %v3327_v47  ;;  %2810 = vmatmul.mubr.msk.bf16.vlgmr.msra.gmra.mxu1 %vm767_vm5, %v3327_v47 }
 0x2a4   : > { %2790 = vmatpush3.bf16.msra.mxu0 %v3004_v45  ;;  %2822 = vmatpush3.bf16.msra.mxu1 %v3005_v46 }
 0x2a5   : > { %2791 = vmatprep.subr.bf16.mxu0 %v3095_v33  ;;  %2823 = vmatprep.subr.bf16.mxu1 %v3095_v33 }
 0x2a6   : > { %2793 = vmatprep.mubr.msk.bf16.mxu0 %vm3096_vm6, %v3095_v33  ;;  %2825 = vmatprep.mubr.msk.bf16.mxu1 %vm3096_vm6, %v3095_v33 }
 0x2a8   : > { %2792 = vmatpush3.bf16.msra.mxu0 %v3006_v48  ;;  %2824 = vmatpush3.bf16.msra.mxu1 %v3007_v49 }
 0x2a9   : > { %2797 = vmatprep.subr.bf16.mxu0 %v3095_v33  ;;  %2837 = vmatprep.subr.bf16.mxu1 %v3095_v33 }
 0x2ab   : > { %2794 = vmatmul.mubr.msk.bf16.vlgmr.msra.gmra.mxu0 %vm767_vm5, %v3327_v47  ;;  %2826 = vmatmul.mubr.msk.bf16.vlgmr.msra.gmra.mxu1 %vm767_vm5, %v3327_v47 }
 0x2ac   : > { %2798 = vmatpush3.bf16.msra.mxu0 %v3008_v50  ;;  %2838 = vmatpush3.bf16.msra.mxu1 %v3009_v51 }
 0x2ad   : > { %2799 = vmatprep.subr.bf16.mxu0 %v3095_v33  ;;  %2839 = vmatprep.subr.bf16.mxu1 %v3095_v33 }
 0x2ae   : > { %2801 = vmatprep.mubr.msk.bf16.mxu0 %vm3096_vm6, %v3095_v33  ;;  %2841 = vmatprep.mubr.msk.bf16.mxu1 %vm3096_vm6, %v3095_v33 }
 0x2b0   : > { %2800 = vmatpush3.bf16.msra.mxu0 %v3010_v52  ;;  %2840 = vmatpush3.bf16.msra.mxu1 %v3011_v53  ;;  %v2583_v52 = vld [vmem:[%s3220_s25] ss:$0 sm:$0xff] }
 0x2b1   : > { %2813 = vmatprep.subr.bf16.mxu0 %v3095_v33  ;;  %2853 = vmatprep.subr.bf16.mxu1 %v3095_v33 }
 0x2b3   : > { %2802 = vmatmul.mubr.msk.bf16.vlgmr.msra.gmra.mxu0 %vm767_vm5, %v3327_v47  ;;  %2842 = vmatmul.mubr.msk.bf16.vlgmr.msra.gmra.mxu1 %vm767_vm5, %v3327_v47 }
 0x2b4   : > { %2814 = vmatpush3.bf16.msra.mxu0 %v3012_v54  ;;  %2854 = vmatpush3.bf16.msra.mxu1 %v3013_v55 }
 0x2b5   : > { %2815 = vmatprep.subr.bf16.mxu0 %v3095_v33  ;;  %2855 = vmatprep.subr.bf16.mxu1 %v3095_v33 }
 0x2b6   : > { %2817 = vmatprep.mubr.msk.bf16.mxu0 %vm3096_vm6, %v3095_v33  ;;  %2857 = vmatprep.mubr.msk.bf16.mxu1 %vm3096_vm6, %v3095_v33 }
 0x2b8   : > { %2816 = vmatpush3.bf16.msra.mxu0 %v3014_v56  ;;  %2856 = vmatpush3.bf16.msra.mxu1 %v3015_v57 }
 0x2b9   : > { %2829 = vmatprep.subr.bf16.mxu0 %v3095_v33  ;;  %2869 = vmatprep.subr.bf16.mxu1 %v3095_v33 }
 0x2bb   : > { %2818 = vmatmul.mubr.msk.bf16.vlgmr.msra.gmra.mxu0 %vm767_vm5, %v3327_v47  ;;  %2858 = vmatmul.mubr.msk.bf16.vlgmr.msra.gmra.mxu1 %vm767_vm5, %v3327_v47 }
 0x2bc   : > { %2830 = vmatpush3.bf16.msra.mxu0 %v3016_v58  ;;  %2870 = vmatpush3.bf16.msra.mxu1 %v3017_v59  ;;  %v2589_v59 = vld [vmem:[%s3220_s25 + $0x6] ss:$0 sm:$0xff] }
 0x2bd   : > { %2831 = vmatprep.subr.bf16.mxu0 %v3095_v33  ;;  %2871 = vmatprep.subr.bf16.mxu1 %v3095_v33 }
 0x2be   : > { %2833 = vmatprep.mubr.msk.bf16.mxu0 %vm3096_vm6, %v3095_v33  ;;  %2873 = vmatprep.mubr.msk.bf16.mxu1 %vm3096_vm6, %v3095_v33 }
 0x2c0   : > { %2832 = vmatpush3.bf16.msra.mxu0 %v3018_v60  ;;  %2872 = vmatpush3.bf16.msra.mxu1 %v3019_v61 }
 0x2c1   : > { %2845 = vmatprep.subr.bf16.mxu0 %v3095_v33  ;;  %2883 = vmatprep.subr.bf16.mxu1 %v3095_v33 }
 0x2c3   : > { %2834 = vmatmul.mubr.msk.bf16.vlgmr.msra.gmra.mxu0 %vm767_vm5, %v3327_v47  ;;  %2874 = vmatmul.mubr.msk.bf16.vlgmr.msra.gmra.mxu1 %vm767_vm5, %v3327_v47 }
 0x2c4   : > { %2846 = vmatpush3.bf16.msra.mxu0 %v3020_v62  ;;  %2849 = vmatprep.mubr.msk.bf16.mxu0 %vm3096_vm6, %v3095_v33 }
 0x2c5   : > { %2847 = vmatprep.subr.bf16.mxu0 %v3095_v33  ;;  %2885 = vmatprep.mubr.msk.bf16.mxu1 %vm3096_vm6, %v3095_v33 }
 0x2c8   : > { %2848 = vmatpush3.bf16.msra.mxu0 %v3021_v63 }
 0x2c9   : > { %2861 = vmatprep.subr.bf16.mxu0 %v3095_v33 }
 0x2cb   : > { %2850 = vmatmul.mubr.msk.bf16.vlgmr.msra.gmra.mxu0 %vm767_vm5, %v3327_v47 }
 0x2cc   : > { %2862 = vmatpush3.bf16.msra.mxu0 %v3022_v0  ;;  %2865 = vmatprep.mubr.msk.bf16.mxu0 %vm3096_vm6, %v3095_v33 }
 0x2cd   : > { %2863 = vmatprep.subr.bf16.mxu0 %v3095_v33 }
 0x2d0   : > { %2864 = vmatpush3.bf16.msra.mxu0 %v3023_v1 }
 0x2d1   : > { %2877 = vmatprep.subr.bf16.mxu0 %v3095_v33 }
 0x2d3   : > { %2866 = vmatmul.mubr.msk.bf16.vlgmr.msra.gmra.mxu0 %vm767_vm5, %v3327_v47 }
 0x2d4   : > { %2879 = vmatprep.mubr.msk.bf16.mxu0 %vm3096_vm6, %v3095_v33 }
 0x363   : > { %v3415_v2 = vpop.f32.mrf.mxu0  ;;  %v1134_v3 = vpop.f32.mrf.mxu1 }
 0x364   : > { %v1135_v42 = vadd.f32 %v2586_v34, %v1134_v3  ;;  %v979_v60 = vadd.f32 %v2583_v52, %v3415_v2 }
 0x365   : > { %v2787_v4 = vpop.f32.mrf.mxu0  ;;  %v2811_v5 = vpop.f32.mrf.mxu1 }
 0x366   : > { %v1559_v49 = vpack.c.bf16 %v1135_v42, %v1135_v42  ;;  %v1556_v3 = vpack.c.bf16 %v979_v60, %v979_v60  ;;  %v2585_v5 = vld [vmem:[%s3220_s25 + $0x2] ss:$0 sm:$0xff] }
 0x367   : > { %v981_v6 = vpop.f32.mrf.mxu0  ;;  %v1137_v7 = vpop.f32.mrf.mxu1 }
 0x369   : > { %v2788_v8 = vpop.f32.mrf.mxu0  ;;  %v2812_v9 = vpop.f32.mrf.mxu1 }
 0x36b   : > { %v1030_v11 = vpop.f32.mrf.mxu0  ;;  %v1238_v12 = vpop.f32.mrf.mxu1 }
 0x36c   : > { %v1239_v13 = vadd.f32 %v2588_v10, %v1238_v12  ;;  %v1031_v25 = vadd.f32 %v2584_v17, %v1030_v11  ;;  %v2591_v10 = vld [vmem:[%s3220_s25 + $0x8] ss:$0 sm:$0xff] }
 0x36d   : > { %v2795_v14 = vpop.f32.mrf.mxu0  ;;  %v2827_v15 = vpop.f32.mrf.mxu1 }
 0x36e   : > { %v1561_v16 = vpack.c.bf16 %v1239_v13, %v1239_v13  ;;  %v1557_v31 = vpack.c.bf16 %v1031_v25, %v1031_v25 }
 0x36f   : > { %v1033_v18 = vpop.f32.mrf.mxu0  ;;  %v1241_v19 = vpop.f32.mrf.mxu1 }
 0x370   : > { %v1615_v20 = vsel %vm1564_vm7, %v1561_v16, 0 }
 0x371   : > { %v2796_v21 = vpop.f32.mrf.mxu0  ;;  %v2828_v22 = vpop.f32.mrf.mxu1  ;;  %2884 = vmatpush3.bf16.xpose.msra.mxu1 %v1615_v20 }
 0x372   : > { %2895 = vmatprep.subr.bf16.mxu1 %v3095_v33 }
 0x373   : > { %v1082_v26 = vpop.f32.mrf.mxu0  ;;  %v1342_v27 = vpop.f32.mrf.mxu1 }
 0x374   : > { %v1343_v28 = vadd.f32 %v2590_v23, %v1342_v27  ;;  %v1083_v11 = vadd.f32 %v2585_v5, %v1082_v26 }
 0x375   : > { %v2803_v29 = vpop.f32.mrf.mxu0  ;;  %v2843_v30 = vpop.f32.mrf.mxu1 }
 0x376   : > { %v1563_v32 = vpack.c.bf16 %v1343_v28, %v1343_v28  ;;  %v1558_v15 = vpack.c.bf16 %v1083_v11, %v1083_v11 }
 0x377   : > { %v1085_v35 = vpop.f32.mrf.mxu0  ;;  %v1345_v36 = vpop.f32.mrf.mxu1 }
 0x378   : > { %v1707_v37 = vsel %vm1564_vm7, %v1563_v32, 0  ;;  %2886 = vmatmul.mubr.msk.bf16.vlgmr.msra.gmra.mxu1 %vm1564_vm7, %v1557_v31 }
 0x379   : > { %v2804_v38 = vpop.f32.mrf.mxu0  ;;  %v2844_v39 = vpop.f32.mrf.mxu1  ;;  %2896 = vmatpush3.bf16.xpose.msra.mxu1 %v1707_v37  ;;  %2897 = vmatprep.mubr.msk.bf16.mxu1 %vm3096_vm6, %v3095_v33 }
 0x37a   : > { %2907 = vmatprep.subr.bf16.mxu1 %v3095_v33 }
 0x37b   : > { %v1186_v43 = vpop.f32.mrf.mxu0  ;;  %v1446_v44 = vpop.f32.mrf.mxu1 }
 0x37c   : > { %v1187_v45 = vadd.f32 %v2587_v40, %v1186_v43  ;;  %v1447_v46 = vadd.f32 %v2592_v41, %v1446_v44 }
 0x37d   : > { %v2819_v47 = vpop.f32.mrf.mxu0  ;;  %v2859_v48 = vpop.f32.mrf.mxu1 }
 0x37e   : > { %v1560_v50 = vpack.c.bf16 %v1187_v45, %v1187_v45  ;;  %v1798_v51 = vpack.c.bf16 %v1447_v46, %v1447_v46 }
 0x37f   : > { %v1189_v53 = vpop.f32.mrf.mxu0  ;;  %v1449_v54 = vpop.f32.mrf.mxu1 }
 0x380   : > { %v1569_v55 = vsel %vm1564_vm7, %v1560_v50, 0  ;;  %v1852_v56 = vsel %vm1804_vm8, %v1798_v51, 0  ;;  %2898 = vmatmul.mubr.msk.bf16.vlgmr.msra.gmra.mxu1 %vm1564_vm7, %v1559_v49 }
 0x381   : > { %v2820_v57 = vpop.f32.mrf.mxu0  ;;  %v2860_v58 = vpop.f32.mrf.mxu1  ;;  %2878 = vmatpush3.bf16.xpose.msra.mxu0 %v1569_v55  ;;  %2908 = vmatpush3.bf16.msra.mxu1 %v1852_v56 }
 0x382   : > { %2889 = vmatprep.subr.bf16.mxu0 %v3095_v33  ;;  %2909 = vmatprep.mubr.msk.bf16.mxu1 %vm3096_vm6, %v3095_v33 }
 0x383   : > { %v1290_v61 = vpop.f32.mrf.mxu0  ;;  %v3439_v62 = vpop.f32.mrf.mxu1  ;;  %2919 = vmatprep.subr.bf16.mxu1 %v3095_v33 }
 0x384   : > { %v1291_v63 = vadd.f32 %v2589_v59, %v1290_v61 }
 0x385   : > { %v2835_v0 = vpop.f32.mrf.mxu0  ;;  %v2875_v1 = vpop.f32.mrf.mxu1 }
 0x386   : > { %v1562_v4 = vpack.c.bf16 %v1291_v63, %v1291_v63 }
 0x387   : > { %v1293_v6 = vpop.f32.mrf.mxu0  ;;  %v1553_v7 = vpop.f32.mrf.mxu1 }
 0x388   : > { %v1661_v2 = vsel %vm1564_vm7, %v1562_v4, 0  ;;  %2880 = vmatmul.mubr.msk.bf16.vlgmr.msra.gmra.mxu0 %vm1564_vm7, %v1556_v3  ;;  %v2593_v6 = vld [vmem:[%s3220_s25 + $0xa] ss:$0 sm:$0xff] }
 0x389   : > { %v2836_v8 = vpop.f32.mrf.mxu0  ;;  %v2876_v9 = vpop.f32.mrf.mxu1  ;;  %2890 = vmatpush3.bf16.xpose.msra.mxu0 %v1661_v2  ;;  %2891 = vmatprep.mubr.msk.bf16.mxu0 %vm3096_vm6, %v3095_v33 }
 0x38a   : > { %2901 = vmatprep.subr.bf16.mxu0 %v3095_v33  ;;  %v2594_v9 = vld [vmem:[%s3220_s25 + $0xb] ss:$0 sm:$0xff] }
 0x38b   : > { %v1394_v12 = vpop.f32.mrf.mxu0  ;;  %v1551_v11 = vadd.f32 %v2594_v9, %v3439_v62 }
 0x38c   : > { %v1395_v13 = vadd.f32 %v2591_v10, %v1394_v12 }
 0x38d   : > { %v2851_v14 = vpop.f32.mrf.mxu0 }
 0x38e   : > { %v1797_v16 = vpack.c.bf16 %v1395_v13, %v1395_v13 }
 0x38f   : > { %v1397_v17 = vpop.f32.mrf.mxu0 }
 0x390   : > { %v1806_v18 = vsel %vm1804_vm8, %v1797_v16, 0  ;;  %2892 = vmatmul.mubr.msk.bf16.vlgmr.msra.gmra.mxu0 %vm1564_vm7, %v1558_v15  ;;  %v1800_v16 = vpack.c.bf16 %v1551_v11, %v1551_v11 }
 0x391   : > { %v2852_v19 = vpop.f32.mrf.mxu0  ;;  %2902 = vmatpush3.bf16.msra.mxu0 %v1806_v18  ;;  %2903 = vmatprep.mubr.msk.bf16.mxu0 %vm3096_vm6, %v3095_v33 }
 0x392   : > { %2913 = vmatprep.subr.bf16.mxu0 %v3095_v33 }
 0x393   : > { %v3454_v20 = vpop.f32.mrf.mxu0 }
 0x394   : > { %v1499_v8 = vadd.f32 %v2593_v6, %v3454_v20 }
 0x395   : > { %v2867_v21 = vpop.f32.mrf.mxu0 }
 0x396   : > { %v1799_v12 = vpack.c.bf16 %v1499_v8, %v1499_v8  ;;  %v1944_v21 = vsel %vm1804_vm8, %v1800_v16, 0 }
 0x397   : > { %v1501_v22 = vpop.f32.mrf.mxu0 }
 0x398   : > { %v1898_v17 = vsel %vm1804_vm8, %v1799_v12, 0  ;;  %v1990_v22 = vld [vmem:[%s3615_s18] sm:$0xf] }
 0x399   : > { %v2868_v23 = vpop.f32.mrf.mxu0 }
 0x438   : > { %v1651_v25 = vpop.f32.mrf.mxu1 }
 0x439   : > { %v1752_v38 = vsel %vm1564_vm7, %v1651_v25, -inf }
 0x43a   : > { %v2887_v26 = vpop.f32.mrf.mxu1 }
 0x43c   : > { %v1654_v27 = vpop.f32.mrf.mxu1 }
 0x43d   : > { %v1998_v27 = vsel %vm1804_vm8, %v1990_v22, 0 }
 0x43e   : > { %v2888_v28 = vpop.f32.mrf.mxu1 }
 0x440   : > { %v1743_v29 = vpop.f32.mrf.mxu1 }
 0x441   : > { %v1758_v41 = vsel %vm1564_vm7, %v1743_v29, -inf }
 0x442   : > { %v2899_v30 = vpop.f32.mrf.mxu1 }
 0x444   : > { %v1746_v31 = vpop.f32.mrf.mxu1 }
 0x445   : > { %v1992_v31 = vld [vmem:[%s3615_s18 + $0x8] sm:$0xf] }
 0x446   : > { %v2900_v32 = vpop.f32.mrf.mxu1 }
 0x448   : > { %v1605_v34 = vpop.f32.mrf.mxu0 }
 0x449   : > { %v1749_v35 = vsel %vm1564_vm7, %v1605_v34, -inf }
 0x44a   : > { %1750 = vmax.xlane.f32.xlu1 %v1749_v35  ;;  %v2881_v36 = vpop.f32.mrf.mxu0  ;;  %v2090_v35 = vsel %vm1804_vm8, %v1992_v31, 0 }
 0x44c   : > { %v1608_v37 = vpop.f32.mrf.mxu0 }
 0x44d   : > { %v1993_v37 = vld [vmem:[%s3615_s18 + $0xc] sm:$0xf] }
 0x44e   : > { %1753 = vmax.xlane.f32.xlu1 %v1752_v38  ;;  %v2882_v39 = vpop.f32.mrf.mxu0 }
 0x450   : > { %v1697_v40 = vpop.f32.mrf.mxu0 }
 0x451   : > { %v1755_v42 = vsel %vm1564_vm7, %v1697_v40, -inf }
 0x452   : > { %1759 = vmax.xlane.f32.xlu1 %v1758_v41  ;;  %1756 = vmax.xlane.f32.xlu0 %v1755_v42  ;;  %v2893_v43 = vpop.f32.mrf.mxu0  ;;  %v2136_v41 = vsel %vm1804_vm8, %v1993_v37, 0 }
 0x454   : > { %v1700_v44 = vpop.f32.mrf.mxu0 }
 0x456   : > { %v2894_v45 = vpop.f32.mrf.mxu0 }
 0x4d3   : > { %v1751_v46 = vpop.xlane.xlu1 %1750 }
 0x4d4   : > { %v1761_v47 = vsub.f32 %v1605_v34, %v1751_v46 }
 0x4d6   : > { %v1765_v48 = vmul.f32 1.442695, %v1761_v47 }
 0x4d7   : > { %v1754_v49 = vpop.xlane.xlu1 %1753 }
 0x4d8   : > { %3036 = vpow2.f32 %v1765_v48  ;;  %v1762_v50 = vsub.f32 %v1651_v25, %v1754_v49 }
 0x4da   : > { %v1767_v51 = vmul.f32 1.442695, %v1762_v50 }
 0x4db   : > { %v1760_v52 = vpop.xlane.xlu1 %1759  ;;  %v1757_v53 = vpop.xlane.xlu0 %1756 }
 0x4dc   : > { %3038 = vpow2.f32 %v1767_v51  ;;  %v1764_v54 = vsub.f32 %v1743_v29, %v1760_v52  ;;  %v1763_v55 = vsub.f32 %v1697_v40, %v1757_v53  ;;  %v1991_v29 = vld [vmem:[%s3615_s18 + $0x4] sm:$0xf] }
 0x4dd   : > { %v2044_v30 = vsel %vm1804_vm8, %v1991_v29, 0 }
 0x4de   : > { %v1771_v56 = vmul.f32 1.442695, %v1764_v54  ;;  %v1769_v57 = vmul.f32 1.442695, %v1763_v55 }
 0x4e0   : > { %3040 = vpow2.f32 %v1771_v56 }
 0x4e1   : > { %3042 = vpow2.f32 %v1769_v57 }
 0x4e5   : > { %v3037_v58 = vpop.eup %3036 }
 0x4e6   : > { %v1773_v59 = vsel %vm1564_vm7, %v3037_v58, 0.0 }
 0x4e7   : > { %1774 = vadd.xlane.f32.xlu0 %v1773_v59 }
 0x4e9   : > { %v3039_v60 = vpop.eup %3038 }
 0x4ea   : > { %v1776_v61 = vsel %vm1564_vm7, %v3039_v60, 0.0 }
 0x4eb   : > { %1777 = vadd.xlane.f32.xlu1 %v1776_v61 }
 0x4ed   : > { %v3041_v63 = vpop.eup %3040 }
 0x4ee   : > { %v3043_v0 = vpop.eup %3042  ;;  %v1782_v1 = vsel %vm1564_vm7, %v3041_v63, 0.0 }
 0x4ef   : > { %1783 = vadd.xlane.f32.xlu1 %v1782_v1  ;;  %v1779_v3 = vsel %vm1564_vm7, %v3043_v0, 0.0 }
 0x4f0   : > { %1780 = vadd.xlane.f32.xlu0 %v1779_v3 }
 0x570   : > { %v1775_v4 = vpop.xlane.xlu0 %1774 }
 0x571   : > { %3044 = vrcp.f32 %v1775_v4 }
 0x574   : > { %v1778_v5 = vpop.xlane.xlu1 %1777 }
 0x575   : > { %3046 = vrcp.f32 %v1778_v5 }
 0x578   : > { %v1784_v7 = vpop.xlane.xlu1 %1783 }
 0x579   : > { %3048 = vrcp.f32 %v1784_v7  ;;  %v1781_v2 = vpop.xlane.xlu0 %1780 }
 0x57a   : > { %3050 = vrcp.f32 %v1781_v2 }
 0x57e   : > { %v3045_v10 = vpop.eup %3044 }
 0x57f   : > { %v1789_v13 = vmul.f32 %v3045_v10, %v3037_v58 }
 0x581   : > { %v1793_v14 = vpack.c.bf16 %v1789_v13, %v1789_v13 }
 0x582   : > { %v3047_v15 = vpop.eup %3046 }
 0x583   : > { %2904 = vmatmul.mubr.msk.bf16.vlgmr.msra.gmra.mxu0 %vm1564_vm7, %v1793_v14  ;;  %v1790_v18 = vmul.f32 %v3047_v15, %v3039_v60  ;;  %v2643_v14 = vld [vmem:[%s3616_s29] ss:$0 sm:$0xff] }
 0x584   : > { %2914 = vmatpush3.bf16.msra.mxu0 %v1898_v17  ;;  %2915 = vmatprep.mubr.msk.bf16.mxu0 %vm3096_vm6, %v3095_v33 }
 0x585   : > { %v1794_v19 = vpack.c.bf16 %v1790_v18, %v1790_v18  ;;  %2925 = vmatprep.subr.bf16.mxu0 %v3095_v33 }
 0x586   : > { %v3049_v20 = vpop.eup %3048 }
 0x587   : > { %v3051_v62 = vpop.eup %3050  ;;  %2910 = vmatmul.mubr.msk.bf16.vlgmr.msra.gmra.mxu1 %vm1564_vm7, %v1794_v19  ;;  %v1792_v25 = vmul.f32 %v3049_v20, %v3041_v63 }
 0x588   : > { %2920 = vmatpush3.bf16.msra.mxu1 %v1944_v21  ;;  %v1791_v23 = vmul.f32 %v3051_v62, %v3043_v0  ;;  %2921 = vmatprep.mubr.msk.bf16.mxu1 %vm3096_vm6, %v3095_v33 }
 0x589   : > { %2931 = vmatprep.subr.bf16.mxu1 %v3095_v33  ;;  %v1796_v28 = vpack.c.bf16 %v1792_v25, %v1792_v25  ;;  %v3024_v25 = vld [vmem:[%s3233_s22 + $0x8] sm:$0xff]  }
 0x58a   : > { %v1795_v26 = vpack.c.bf16 %v1791_v23, %v1791_v23 }
 0x58c   : > { %2916 = vmatmul.mubr.msk.bf16.vlgmr.msra.gmra.mxu0 %vm1564_vm7, %v1795_v26  ;;  %v3026_v26 = vld [vmem:[%s3243_s5 + $0x38] sm:$0xff]  }
 0x58d   : > { %2926 = vmatpush3.bf16.msra.mxu0 %v1998_v27  ;;  %2927 = vmatprep.mubr.msk.bf16.mxu0 %vm3096_vm6, %v3095_v33  ;;  %v3027_v27 = vld [vmem:[%s3243_s5 + $0x30] sm:$0xff]  }
 0x58e   : > { %2937 = vmatprep.subr.bf16.mxu0 %v3095_v33 }
 0x58f   : > { %2922 = vmatmul.mubr.msk.bf16.vlgmr.msra.gmra.mxu1 %vm1564_vm7, %v1796_v28 }
 0x590   : > { %2933 = vmatprep.mubr.msk.bf16.mxu1 %vm3096_vm6, %v3095_v33  ;;  %2932 = vmatpush3.bf16.msra.mxu1 %v2044_v30 }
 0x591   : > { %2943 = vmatprep.subr.bf16.mxu1 %v3095_v33 }
 0x643   : > { %v1842_v32 = vpop.f32.mrf.mxu0 }
 0x644   : > { %v1986_v34 = vpack.c.bf16 %v1842_v32, %v1842_v32  ;;  %v2644_v32 = vld [vmem:[%s636_s30] ss:$0 sm:$0xff] }
 0x645   : > { %v2905_v36 = vpop.f32.mrf.mxu0 }
 0x646   : > { %2928 = vmatmul.mubr.msk.bf16.vlgmr.msra.gmra.mxu0 %vm1564_vm7, %v1986_v34 }
 0x647   : > { %v1845_v38 = vpop.f32.mrf.mxu0  ;;  %v1888_v39 = vpop.f32.mrf.mxu1  ;;  %2938 = vmatpush3.bf16.msra.mxu0 %v2090_v35  ;;  %2939 = vmatprep.mubr.msk.bf16.mxu0 %vm3096_vm6, %v3095_v33  ;;  %v2645_v35 = vld [vmem:[%s639_s17] ss:$0 sm:$0xff] }
 0x648   : > { %v1987_v40 = vpack.c.bf16 %v1888_v39, %v1888_v39  ;;  %2949 = vmatprep.subr.bf16.mxu0 %v3095_v33  ;;  %v3028_v39 = vld [vmem:[%s3243_s5 + $0x28] sm:$0xff]  }
 0x649   : > { %v2906_v42 = vpop.f32.mrf.mxu0  ;;  %v2911_v43 = vpop.f32.mrf.mxu1 }
 0x64a   : > { %2934 = vmatmul.mubr.msk.bf16.vlgmr.msra.gmra.mxu1 %vm1564_vm7, %v1987_v40  ;;  %v3029_v40 = vld [vmem:[%s3243_s5 + $0x20] sm:$0xff]   ;;  %v3031_v42 = vld [vmem:[%s3243_s5 + $0x10] sm:$0xff]   ;;  %v3032_v43 = vld [vmem:[%s3243_s5 + $0x8] sm:$0xff]  }
 0x64b   : > { %v1891_v44 = vpop.f32.mrf.mxu1  ;;  %2944 = vmatpush3.bf16.msra.mxu1 %v2136_v41  ;;  %2945 = vmatprep.mubr.msk.bf16.mxu1 %vm3096_vm6, %v3095_v33  ;;  %v3030_v41 = vld [vmem:[%s3243_s5 + $0x18] sm:$0xff]  }
 0x64c   : > { %v1934_v45 = vpop.f32.mrf.mxu0  ;;  %2957 = vmatprep.subr.bf16.mxu1 %v3095_v33  ;;  %v3033_v44 = vld [vmem:[%s3243_s5] sm:$0xff]  }
 0x64d   : > { %v1988_v46 = vpack.c.bf16 %v1934_v45, %v1934_v45  ;;  %v2912_v47 = vpop.f32.mrf.mxu1  ;;  %v2646_v45 = vld [vmem:[%s647_s23] ss:$0 sm:$0xff]  ;;  %s3097_s23 = smov [#allocation2]  }
 0x64e   : > { %v2917_v48 = vpop.f32.mrf.mxu0  ;;  %s2416_s28 = sshll.u32 %s3097_s23, 4  ;;  %s2417_s28 = int_to_ptr.vmem [resolvable:$true] %s2416_s28 }
 0x64f   : > { %2940 = vmatmul.mubr.msk.bf16.vlgmr.msra.gmra.mxu0 %vm1564_vm7, %v1988_v46  ;;  %v1980_v49 = vpop.f32.mrf.mxu1  ;;  %s3056_s21 = scalar_lea.vmem %s2417_s28, 128  ;;  %p3063_p9 = scmp.lt.s32.totalorder %s2417_s28, %s2417_s28 }
 0x650   : > { %v1937_v50 = vpop.f32.mrf.mxu0  ;;  %v1989_v51 = vpack.c.bf16 %v1980_v49, %v1980_v49  ;;  %2953 = vmatprep.mubr.msk.bf16.mxu0 %vm3096_vm6, %v3095_v33  ;;  %2950 = vmatpush3.bf16.msra.mxu0 %v3024_v25  ;;  %p3057_p6 = scmp.ne.s32.totalorder %s2417_s28, %s3056_s21  ;;  %p3064_p10 = scmp.lt.s32.totalorder %s3056_s21, %s3056_s21 }
 0x651   : > { %v2923_v52 = vpop.f32.mrf.mxu1  ;;  %2951 = vmatprep.subr.bf16.mxu0 %v3095_v33 }
 0x652   : > { %v2918_v53 = vpop.f32.mrf.mxu0  ;;  %2946 = vmatmul.mubr.msk.bf16.vlgmr.msra.gmra.mxu1 %vm1564_vm7, %v1989_v51  ;;  %p3058_p7 = pnand %p3057_p6, %p2983_p5  ;;  %p3065_p11 = por %p3064_p10, %p3063_p9 }
 0x653   : > { %v1983_v54 = vpop.f32.mrf.mxu1  ;;  %2973 = vmatprep.mubr.msk.bf16.mxu1 %vm3096_vm6, %v3095_v33  ;;  %2958 = vmatpush3.bf16.msra.mxu1 %v3026_v26 }
 0x654   : > { %2959 = vmatprep.subr.bf16.mxu1 %v3095_v33  ;;  %p3059_p8 = pneg %p3058_p7 }
 0x655   : > { %v2924_v55 = vpop.f32.mrf.mxu1 }
 0x656   : > { %p3066_p12 = pnand %p3065_p11, %p3059_p8 }
 0x657   : > { %2960 = vmatpush3.bf16.msra.mxu1 %v3027_v27 }
 0x658   : > { %2961 = vmatprep.subr.bf16.mxu1 %v3095_v33 }
 0x65b   : > { %2962 = vmatpush3.bf16.msra.mxu1 %v3028_v39 }
 0x65c   : > { %2963 = vmatprep.subr.bf16.mxu1 %v3095_v33 }
 0x65f   : > { %2964 = vmatpush3.bf16.msra.mxu1 %v3029_v40 }
 0x660   : > { %2965 = vmatprep.subr.bf16.mxu1 %v3095_v33 }
 0x663   : > { %2966 = vmatpush3.bf16.msra.mxu1 %v3030_v41 }
 0x664   : > { %2967 = vmatprep.subr.bf16.mxu1 %v3095_v33 }
 0x667   : > { %2968 = vmatpush3.bf16.msra.mxu1 %v3031_v42 }
 0x668   : > { %2969 = vmatprep.subr.bf16.mxu1 %v3095_v33 }
 0x66b   : > { %2970 = vmatpush3.bf16.msra.mxu1 %v3032_v43 }
 0x66c   : > { %2971 = vmatprep.subr.bf16.mxu1 %v3095_v33 }
 0x66f   : > { %2972 = vmatpush3.bf16.msra.mxu1 %v3033_v44 }
 0x706   : > { %v2034_v56 = vpop.f32.mrf.mxu0 }
 0x707   : > { %v2178_v1 = vsel %vm767_vm5, %v2034_v56, 0.0  ;;  %v2650_v56 = vld [vmem:[%s655_s7] ss:$0 sm:$0xff] }
 0x708   : > { %v2929_v57 = vpop.f32.mrf.mxu0 }
 0x70a   : > { %v2037_v58 = vpop.f32.mrf.mxu0  ;;  %v2080_v59 = vpop.f32.mrf.mxu1 }
 0x70b   : > { %v2179_v63 = vsel %vm767_vm5, %v2080_v59, 0.0 }
 0x70c   : > { %v2930_v60 = vpop.f32.mrf.mxu0  ;;  %v2935_v61 = vpop.f32.mrf.mxu1  ;;  %v2180_v4 = vadd.f32 %v2179_v63, %v2178_v1 }
 0x70e   : > { %v2083_v0 = vpop.f32.mrf.mxu1 }
 0x70f   : > { %v2126_v3 = vpop.f32.mrf.mxu0 }
 0x710   : > { %v2181_v5 = vsel %vm767_vm5, %v2126_v3, 0.0  ;;  %v2936_v6 = vpop.f32.mrf.mxu1 }
 0x711   : > { %v2941_v7 = vpop.f32.mrf.mxu0  ;;  %v2182_v2 = vadd.f32 %v2181_v5, %v2180_v4 }
 0x712   : > { %v2172_v8 = vpop.f32.mrf.mxu1 }
 0x713   : > { %v2129_v9 = vpop.f32.mrf.mxu0  ;;  %v2183_v10 = vsel %vm767_vm5, %v2172_v8, 0.0 }
 0x714   : > { %v2184_v11 = vadd.f32 %v2183_v10, %v2182_v2  ;;  %v2947_v12 = vpop.f32.mrf.mxu1 }
 0x715   : > { %v2942_v13 = vpop.f32.mrf.mxu0 }
 0x716   : > { %v2185_v15 = vadd.f32 %v2184_v11, %v3295_v24  ;;  %v2175_v16 = vpop.f32.mrf.mxu1  ;;  %v3025_v24 = vld [vmem:[%s3233_s22] sm:$0xff]  }
 0x717   : > { %2952 = vmatpush3.bf16.msra.mxu0 %v3025_v24 }
 0x718   : > { %v2948_v17 = vpop.f32.mrf.mxu1  ;;  %v3518_v18 = vadd.f32 %v2643_v14, %v2185_v15 }
 0x71a   : > { %v2196_v19 = vsel %vm767_vm5, %v3518_v18, 0.0 }
 0x71b   : > { %2197 = vadd.xlane.f32.xlu0 %v2196_v19 }
 0x7a4   : > { %v2198_v20 = vpop.xlane.xlu0 %2197 }
 0x7a5   : > { %v2199_v62 = vmul.f32 0.03125, %v2198_v20 }
 0x7a7   : > { %v2200_v21 = vsub.f32 %v3518_v18, %v2199_v62 }
 0x7a9   : > { %v2201_v22 = vmul.f32 %v2200_v21, %v2200_v21 }
 0x7ab   : > { %v2202_v23 = vsel %vm767_vm5, %v2201_v22, 0.0 }
 0x7ac   : > { %2203 = vadd.xlane.f32.xlu1 %v2202_v23 }
 0x835   : > { %v2204_v28 = vpop.xlane.xlu1 %2203 }
 0x836   : > { %v2205_v29 = vmul.f32 0.03125, %v2204_v28 }
 0x838   : > { %v2206_v30 = vadd.f32 1e-05, %v2205_v29 }
 0x83a   : > { %3052 = vrsqrt.f32 %v2206_v30 }
 0x847   : > { %v3053_v31 = vpop.eup %3052 }
 0x848   : > { %v2208_v34 = vmul.f32 %v3053_v31, %v2200_v21 }
 0x84a   : > { %v2215_v36 = vmul.f32 %v2644_v32, %v2208_v34 }
 0x84c   : > { %v2222_v37 = vadd.f32 %v2645_v35, %v2215_v36 }
 0x84e   : > { %v2223_v38 = vpack.c.bf16 %v2222_v37, %v2222_v37 }
 0x850   : > { %2954 = vmatmul.mubr.msk.bf16.vlgmr.msra.gmra.mxu0 %vm767_vm5, %v2223_v38 }
 0x910   : > { %v2284_v46 = vpop.f32.mrf.mxu0 }
 0x911   : > { %v2285_v47 = vadd.f32 %v2646_v45, %v2284_v46 }
 0x912   : > { %v2955_v48 = vpop.f32.mrf.mxu0 }
 0x913   : > { %v2291_v49 = vmul.f32 0.70710677, %v2285_v47  ;;  %v2290_v53 = vmul.f32 0.5, %v2285_v47 }
 0x914   : > { %v2287_v50 = vpop.f32.mrf.mxu0 }
 0x915   : > { %3054 = verf.f32 %v2291_v49 }
 0x916   : > { %v2956_v51 = vpop.f32.mrf.mxu0 }
 0x922   : > { %v3055_v52 = vpop.eup %3054 }
 0x923   : > { %v2293_v54 = vadd.f32 1.0, %v3055_v52 }
 0x925   : > { %v2294_v33 = vmul.f32 %v2293_v54, %v2290_v53 }
 0x927   : > { %v2295_v55 = vpack.c.bf16 %v2294_v33, %v2294_v33 }
 0x929   : > { %2974 = vmatmul.mubr.bf16.vlgmr.msra.gmra.mxu1 %v2295_v55 }
 0x9e9   : > { %v2401_v57 = vpop.f32.mrf.mxu1 }
 0x9ea   : > { %v2402_v58 = vadd.f32 %v2650_v56, %v2401_v57 }
 0x9eb   : > { %v2975_v59 = vpop.f32.mrf.mxu1 }
 0x9ec   : > { %v2407_v60 = vadd.f32 %v2402_v58, %v3518_v18 }
 0x9ed   : > { %v2404_v61 = vpop.f32.mrf.mxu1 }
 0x9ee   : > { %2408 = vst.msk [vmem:[#allocation2] sm:$0xff] %vm767_vm5, %v2407_v60 }
 0x9ef   : > { %v2976_v63 = vpop.f32.mrf.mxu1 }
 0x9f0   : > { %3069 = shalt.err (!%p3066_p12)
}
 0x9f1   : > { %s3617_s27 = sld [smem:[#allocation12_spill]] }
 0x9f7   : > { %2980 = dma.vmem_to_hbm [thread:$0]  (%p2983_p5), %s2417_s28, 128, %s3617_s27, [#allocation3]  }
 0x9f8   : > { %3085 = dma.done.wait (%p2983_p5), [#allocation3], 128  }
 0x9f9   : > { %3087 = vsyncadd (%p2983_p5), [#allocation3], 4294967168 }
 0x9fa PF: > { %s3618_s2 = sld [smem:[#allocation5_spill]] }
 0xa00   : > { %s26_s18 = sadd.s32 1, %s3618_s2  }
 0xa01   : > { %p23_p13 = scmp.ge.s32.totalorder %s26_s18, 4  }
 0xa03   :  { %25 = sbr.rel (!%p23_p13) target bundleno = 8 (0x8), region = 144 }
 0xa08   :  { %2429 = vsyncpa [#allocation3], 1 }
 0xa09   :  { %2431 = vsyncpa [#allocation3 + $0x1], 1 }

</bundles_post_ra>
